<compile_context>
chip_gen: v7x
topology: tpu7x:2x2x1
jax: 0.10.0
libtpu: 0.0.40
codegen_flags: <defaults>
</compile_context>

<pallas_src>
import jax
import jax.numpy as jnp
from jax import lax
from jax.experimental import pallas as pl
from jax.experimental.pallas import tpu as pltpu


def _make_layernorm_kernel(d: int, eps: float):
    inv_d = 1.0 / float(d)
    eps = float(eps)

    def kernel(x_ref, g_ref, b_ref, o_ref):
        # x: (tr, D); g, b: (1, D); o: (tr, D)
        x = x_ref[...]
        if x.dtype != jnp.float32:
            x = x.astype(jnp.float32)

        # Centered two-pass moments: both reductions run on the VMEM-resident
        # tile (XLU/VPU work hidden under the DMA of the next block).
        mean = jnp.sum(x, axis=-1, keepdims=True) * inv_d
        xc = x - mean
        var = jnp.sum(xc * xc, axis=-1, keepdims=True) * inv_d
        inv_std = lax.rsqrt(jnp.maximum(var, 0.0) + eps)  # clamp: NaN guard

        g = g_ref[...]
        b = b_ref[...]
        if g.dtype != jnp.float32:
            g = g.astype(jnp.float32)
        if b.dtype != jnp.float32:
            b = b.astype(jnp.float32)

        y = xc * inv_std * g + b
        o_ref[...] = y.astype(o_ref.dtype)

    return kernel


def _round_up(x: int, m: int) -> int:
    return ((x + m - 1) // m) * m


def mtgnn_layer_norm(x, weight, bias, idx, *, eps=1e-5, tile_rows=None):
    """x: (B, C, N, T); weight/bias: (C, N_total, T); idx: (N,) int.

    Equivalent to:
      F.layer_norm(x, x.shape[1:], weight[:, idx, :], bias[:, idx, :], eps)
    """
    B, C, N, T = x.shape
    D = C * N * T

    # Node-subset gather of the affine parameters (done once, outside the grid).
    g = jnp.take(weight, idx, axis=1).reshape(1, D)
    b = jnp.take(bias, idx, axis=1).reshape(1, D)
    x2d = x.reshape(B, D)  # contiguous reshape: no copy

    x_bytes = jnp.dtype(x.dtype).itemsize
    p_bytes = jnp.dtype(weight.dtype).itemsize
    sub = 16 if x_bytes == 2 else 8  # sublane quantum (bf16 packs 16 rows/vreg)

    # ---- VMEM budget / row-tile sizing (per generation) --------------------
    try:
        vmem_cap = int(pltpu.get_tpu_info().vmem_capacity_bytes)
    except Exception:
        vmem_cap = 64 * 1024 * 1024  # conservative fallback: v7x per-TC VMEM
    budget = int(vmem_cap * 0.6)     # headroom for f32 temps / spills

    # Live bytes per row: double-buffered input + output blocks + f32 temps.
    per_row = D * (2 * x_bytes + 2 * x_bytes + 2 * 4)
    fixed = 2 * 2 * D * p_bytes      # gamma + beta, double-buffered
    tr_vmem = max(sub, ((budget - fixed) // per_row) // sub * sub)
    # TODO(synk): if even tr=sub rows overflow VMEM (huge D), add a trailing
    # "arbitrary" grid axis over D with (sum, sumsq) scratch accumulators.

    # Target >= ~4 MiB per x block to amortize per-grid-step overhead.
    if tile_rows is None:
        tr = _round_up(max(-(-(4 * 1024 * 1024) // (D * x_bytes)), sub), sub)
    else:
        tr = _round_up(max(int(tile_rows), 1), sub)
    tr = min(tr, tr_vmem)

    # Keep the row grid >= 2 steps when possible so the "parallel" axis can be
    # sharded across v7x's two TensorCores (no-op on single-TC v5e/v6e).
    if B >= 2 * sub:
        tr = max(sub, min(tr, _round_up(-(-B // 2), sub)))

    if B <= tr:
        tr = B  # single block with full row dim (always a legal block shape)
    grid_rows = pl.cdiv(B, tr)

    # VMEM limit derived from the actual blocks, leaving ~1/8 of VMEM spare.
    need = 4 * tr * D * x_bytes + fixed + 2 * tr * D * 4
    vmem_limit = int(min(vmem_cap - vmem_cap // 8,
                         max(need + (8 << 20), 32 << 20)))

    kernel = _make_layernorm_kernel(D, float(eps))

    out = pl.pallas_call(
        kernel,
        out_shape=jax.ShapeDtypeStruct((B, D), x.dtype),
        grid_spec=pltpu.PrefetchScalarGridSpec(
            num_scalar_prefetch=0,
            grid=(grid_rows,),
            in_specs=[
                pl.BlockSpec((tr, D), lambda i: (i, 0)),  # x row tile
                pl.BlockSpec((1, D), lambda i: (0, 0)),   # gamma (resident)
                pl.BlockSpec((1, D), lambda i: (0, 0)),   # beta  (resident)
            ],
            out_specs=pl.BlockSpec((tr, D), lambda i: (i, 0)),
        ),
        compiler_params=pltpu.CompilerParams(
            dimension_semantics=("parallel",),
            vmem_limit_bytes=vmem_limit,
        ),
    )(x2d, g, b)

    return out.reshape(B, C, N, T)


def _reference(x, weight, bias, idx, eps):
    # Pure-JAX reference (centered moments, matching F.layer_norm + affine).
    B = x.shape[0]
    xr = x.reshape(B, -1).astype(jnp.float32)
    mu = jnp.mean(xr, axis=1, keepdims=True)
    xc = xr - mu
    var = jnp.mean(xc * xc, axis=1, keepdims=True)
    xhat = (xc * lax.rsqrt(var + eps)).reshape(x.shape)
    w = jnp.take(weight, idx, axis=1)[None].astype(jnp.float32)
    b = jnp.take(bias, idx, axis=1)[None].astype(jnp.float32)
    return (xhat * w + b).astype(x.dtype)


if __name__ == "__main__":
    eps = 1e-5
    key = jax.random.PRNGKey(0)

    def run_case(k, B, C, N_sel, T, N_total):
        kx, kw, kb, ki = jax.random.split(k, 4)
        x = jax.random.normal(kx, (B, C, N_sel, T), dtype=jnp.float32)
        # Module initializes weight=1, bias=0; random values exercise the
        # idx-gather + affine path (as after training).
        weight = jax.random.normal(kw, (C, N_total, T), dtype=jnp.float32)
        bias = jax.random.normal(kb, (C, N_total, T), dtype=jnp.float32)
        idx = jax.random.permutation(ki, N_total)[:N_sel].astype(jnp.int32)

        y = mtgnn_layer_norm(x, weight, bias, idx, eps=eps)
        jax.block_until_ready(y)
        y_ref = _reference(x, weight, bias, idx, eps)
        assert jnp.allclose(y, y_ref, atol=1e-4, rtol=1e-4), \
            f"mismatch vs reference for shape {(B, C, N_sel, T)}"

    k1, k2, k3 = jax.random.split(key, 3)
    # Primary module-consistent small shape: single full-dim block.
    run_case(k1, B=2, C=4, N_sel=16, T=16, N_total=20)
    # Partial last row block (B=20 -> tr=16, 2-step grid), 128-multiple D.
    run_case(k2, B=20, C=4, N_sel=12, T=8, N_total=15)
    # Non-128-multiple feature dim (D=105), full-dim block, no lane pad.
    run_case(k3, B=4, C=3, N_sel=5, T=7, N_total=6)

    print("KERNEL_OK")
</pallas_src>

<mosaic_0001>
module attributes {stable_mosaic.version = 11 : i64} {
  func.func @kernel(%arg0: i32, %arg1: memref<2x1024xf32, #tpu.memory_space<vmem>>, %arg2: memref<1x1024xf32, #tpu.memory_space<vmem>>, %arg3: memref<1x1024xf32, #tpu.memory_space<vmem>>, %arg4: memref<2x1024xf32, #tpu.memory_space<vmem>>) attributes {dimension_semantics = [#tpu.dimension_semantics<parallel>], iteration_bounds = array<i64: 1>, scalar_prefetch = 0 : i64, scratch_operands = 0 : i64, tpu.core_type = #tpu.core_type<tc>, window_params = [{transform_indices = @transform_0, window_bounds = array<i64: 2, 1024>}, {pipeline_mode = #tpu.pipeline_mode<synchronous>, transform_indices = @transform_1, window_bounds = array<i64: 1, 1024>}, {pipeline_mode = #tpu.pipeline_mode<synchronous>, transform_indices = @transform_2, window_bounds = array<i64: 1, 1024>}, {transform_indices = @transform_3, window_bounds = array<i64: 2, 1024>}]} {
    %c0 = arith.constant 0 : index
    %c0_0 = arith.constant 0 : index
    %0 = vector.load %arg1[%c0, %c0_0] : memref<2x1024xf32, #tpu.memory_space<vmem>>, vector<2x1024xf32>
    %cst = arith.constant dense<0.000000e+00> : vector<2xf32>
    %1 = vector.multi_reduction <add>, %0, %cst [1] : vector<2x1024xf32> to vector<2xf32>
    %2 = vector.shape_cast %1 : vector<2xf32> to vector<2x1xf32>
    %cst_1 = arith.constant 9.765625E-4 : f32
    %3 = vector.broadcast %cst_1 : f32 to vector<2x1xf32>
    %4 = arith.mulf %2, %3 : vector<2x1xf32>
    %5 = vector.broadcast %4 : vector<2x1xf32> to vector<2x1024xf32>
    %6 = arith.subf %0, %5 : vector<2x1024xf32>
    %7 = arith.mulf %6, %6 : vector<2x1024xf32>
    %cst_2 = arith.constant dense<0.000000e+00> : vector<2xf32>
    %8 = vector.multi_reduction <add>, %7, %cst_2 [1] : vector<2x1024xf32> to vector<2xf32>
    %9 = vector.shape_cast %8 : vector<2xf32> to vector<2x1xf32>
    %cst_3 = arith.constant 9.765625E-4 : f32
    %10 = vector.broadcast %cst_3 : f32 to vector<2x1xf32>
    %11 = arith.mulf %9, %10 : vector<2x1xf32>
    %cst_4 = arith.constant 0.000000e+00 : f32
    %12 = vector.broadcast %cst_4 : f32 to vector<2x1xf32>
    %13 = arith.maximumf %11, %12 : vector<2x1xf32>
    %cst_5 = arith.constant 9.99999974E-6 : f32
    %14 = vector.broadcast %cst_5 : f32 to vector<2x1xf32>
    %15 = arith.addf %13, %14 : vector<2x1xf32>
    %16 = math.rsqrt %15 : vector<2x1xf32>
    %c0_6 = arith.constant 0 : index
    %c0_7 = arith.constant 0 : index
    %17 = vector.load %arg2[%c0_6, %c0_7] : memref<1x1024xf32, #tpu.memory_space<vmem>>, vector<1x1024xf32>
    %c0_8 = arith.constant 0 : index
    %c0_9 = arith.constant 0 : index
    %18 = vector.load %arg3[%c0_8, %c0_9] : memref<1x1024xf32, #tpu.memory_space<vmem>>, vector<1x1024xf32>
    %19 = vector.broadcast %16 : vector<2x1xf32> to vector<2x1024xf32>
    %20 = arith.mulf %6, %19 : vector<2x1024xf32>
    %21 = vector.broadcast %17 : vector<1x1024xf32> to vector<2x1024xf32>
    %22 = arith.mulf %20, %21 : vector<2x1024xf32>
    %23 = vector.broadcast %18 : vector<1x1024xf32> to vector<2x1024xf32>
    %24 = arith.addf %22, %23 : vector<2x1024xf32>
    %c0_10 = arith.constant 0 : index
    %c0_11 = arith.constant 0 : index
    %25 = vector.load %arg4[%c0_10, %c0_11] : memref<2x1024xf32, #tpu.memory_space<vmem>>, vector<2x1024xf32>
    tpu.vector_store %arg4[%c0_10, %c0_11], %24 {strides = array<i32>} : memref<2x1024xf32, #tpu.memory_space<vmem>>, vector<2x1024xf32>,
    return
  }
  func.func @transform_0(%arg0: i32) -> (i32, i32) {
    %c0_i32 = arith.constant 0 : i32
    %c0_i32_0 = arith.constant 0 : i32
    return %arg0, %c0_i32 : i32, i32
  }
  func.func @transform_1(%arg0: i32) -> (i32, i32) {
    %c0_i32 = arith.constant 0 : i32
    %c0_i32_0 = arith.constant 0 : i32
    %c0_i32_1 = arith.constant 0 : i32
    return %c0_i32, %c0_i32_0 : i32, i32
  }
  func.func @transform_2(%arg0: i32) -> (i32, i32) {
    %c0_i32 = arith.constant 0 : i32
    %c0_i32_0 = arith.constant 0 : i32
    %c0_i32_1 = arith.constant 0 : i32
    return %c0_i32, %c0_i32_0 : i32, i32
  }
  func.func @transform_3(%arg0: i32) -> (i32, i32) {
    %c0_i32 = arith.constant 0 : i32
    %c0_i32_0 = arith.constant 0 : i32
    return %arg0, %c0_i32 : i32, i32
  }
}

</mosaic_0001>

<bundles_post_ra>
// kernel: tpu_custom_call.1
= control target key start
LH: loop header
LB: loop body
LE: loop exit
PB: predicated region body
PF: predicated region fallthrough
CT: control target
= control target key end

     0   :  { %8 = vsyncpa [#allocation3], 0  ;;  %s604_s0 = inlined_call_operand.hbm [shape: f32[2,1024], index: 0, kind: input, shape index: {}]   ;;  %s605_s1 = inlined_call_operand.hbm [shape: f32[1,1024], index: 1, kind: input, shape index: {}]   ;;  %s606_s2 = inlined_call_operand.hbm [shape: f32[1,1024], index: 2, kind: input, shape index: {}]   ;;  %s607_s3 = inlined_call_operand.hbm [shape: f32[2,1024], index: 3, kind: output, shape index: {}]  }
   0x1   :  { %9 = vsyncpa [#allocation6], 0 }
   0x2   :  { %10 = vsyncpa [#allocation4], 0  ;;  %s470_s12 = smov [#allocation5]   ;;  %s471_s14 = smov [#allocation2]  }
   0x3   :  { %s27_s13 = sshll.u32 %s470_s12, 4  ;;  %s17_s15 = sshll.u32 %s471_s14, 4  ;;  %s28_s13 = int_to_ptr.vmem [resolvable:$true] %s27_s13  ;;  %s18_s15 = int_to_ptr.vmem [resolvable:$true] %s17_s15 }
   0x4   :  { %s376_s18 = scalar_lea.hbm %s605_s1, 128 }
   0x5   :  { %p377_p0 = scmp.ne.s32.totalorder %s605_s1, %s376_s18  ;;  %p380_p1 = scmp.lt.u32.totalorder %s376_s18, %s605_s1 }
   0x7   :  { %p382_p2 = pnand %p380_p1, %p377_p0 }
   0x9   :  { %385 = shalt.err (!%p382_p2)
}
   0xa   :  { %s386_s23 = scalar_lea.vmem %s28_s13, 128  ;;  %p391_p4 = scmp.lt.s32.totalorder %s28_s13, %s28_s13 }
   0xb   :  { %p387_p3 = scmp.ne.s32.totalorder %s28_s13, %s386_s23  ;;  %p392_p5 = scmp.lt.s32.totalorder %s386_s23, %s386_s23 }
   0xd   :  { %p393_p6 = por %p392_p5, %p391_p4 }
   0xf   :  { %p394_p7 = pnand %p393_p6, %p387_p3 }
  0x11   :  { %397 = shalt.err (!%p394_p7)
}
  0x12   :  { %30 = dma.hbm_to_vmem [thread:$0]  %s605_s1, 128, %s28_s13, [#allocation6]  }
  0x13   :  { %s398_s28 = scalar_lea.hbm %s604_s0, 256 }
  0x14   :  { %p399_p8 = scmp.ne.s32.totalorder %s604_s0, %s398_s28  ;;  %p402_p9 = scmp.lt.u32.totalorder %s398_s28, %s604_s0 }
  0x16   :  { %p404_p10 = pnand %p402_p9, %p399_p8 }
  0x18   :  { %407 = shalt.err (!%p404_p10)
}
  0x19   :  { %s408_s6 = scalar_lea.vmem %s18_s15, 256  ;;  %p413_p12 = scmp.lt.s32.totalorder %s18_s15, %s18_s15 }
  0x1a   :  { %p409_p11 = scmp.ne.s32.totalorder %s18_s15, %s408_s6  ;;  %p414_p13 = scmp.lt.s32.totalorder %s408_s6, %s408_s6 }
  0x1c   :  { %p415_p0 = por %p414_p13, %p413_p12 }
  0x1e   :  { %p416_p1 = pnand %p415_p0, %p409_p11 }
  0x20   :  { %419 = shalt.err (!%p416_p1)
}
  0x21   :  { %20 = dma.hbm_to_vmem [thread:$0]  %s604_s0, 256, %s18_s15, [#allocation3]  }
  0x22   :  { %s472_s8 = smov [#allocation7]   ;;  %s420_s12 = scalar_lea.hbm %s606_s2, 128 }
  0x23   :  { %s37_s9 = sshll.u32 %s472_s8, 4  ;;  %p421_p2 = scmp.ne.s32.totalorder %s606_s2, %s420_s12  ;;  %s38_s9 = int_to_ptr.vmem [resolvable:$true] %s37_s9 }
  0x24   :  { %p424_p3 = scmp.lt.u32.totalorder %s420_s12, %s606_s2 }
  0x26   :  { %p426_p4 = pnand %p424_p3, %p421_p2 }
  0x28   :  { %429 = shalt.err (!%p426_p4)
}
  0x29   :  { %s430_s18 = scalar_lea.vmem %s38_s9, 128  ;;  %p435_p6 = scmp.lt.s32.totalorder %s38_s9, %s38_s9 }
  0x2a   :  { %p431_p5 = scmp.ne.s32.totalorder %s38_s9, %s430_s18  ;;  %p436_p7 = scmp.lt.s32.totalorder %s430_s18, %s430_s18 }
  0x2c   :  { %p437_p8 = por %p436_p7, %p435_p6 }
  0x2e   :  { %p438_p9 = pnand %p437_p8, %p431_p5 }
  0x30   :  { %441 = shalt.err (!%p438_p9)
}
  0x31   :  { %40 = dma.hbm_to_vmem [thread:$0]  %s606_s2, 128, %s38_s9, [#allocation6]  }
  0x32   :  { %464 = dma.done.wait [#allocation3], 256  }
  0x33   :  { %465 = vsyncadd [#allocation3], 4294967040 }
  0x34   :  { %466 = dma.done.wait [#allocation6], 256  }
  0x35   :  { %467 = vsyncadd [#allocation6], 4294967040  ;;  %v58_v0 = vlaneseq  ;;  %v473_v1 = vmov 1983009808   ;;  %v50_v6 = vld [vmem:[#allocation2] sm:$0xff]  ;;  %v51_v7 = vld [vmem:[#allocation2 + $0x8] sm:$0xff] }
  0x36   :  { %v56_v2 = vunpack.c.l.s4 %v473_v1  ;;  %v54_v8 = vcombine.high %v50_v6, %v50_v6  ;;  %vm96_vm0 = vcmask 1041408   ;;  %v71_v12 = vcombine.high %v51_v7, %v51_v7  ;;  %s475_s2 = smov [#allocation8]  }
  0x37   :  { %v532_v3 = vshrl.u32 %v58_v0, 7  ;;  %v474_v33 = vmov 269488144   ;;  %s356_s19 = sshll.u32 %s475_s2, 4  ;;  %s357_s19 = int_to_ptr.vmem [resolvable:$true] %s356_s19 }
  0x38   :  { %v57_v4 = vunpack.c.0.s8 %v56_v2  ;;  %v117_v34 = vunpack.c.l.s4 %v474_v33  ;;  %s442_s20 = scalar_lea.vmem %s357_s19, 256  ;;  %p447_p11 = scmp.lt.s32.totalorder %s357_s19, %s357_s19 }
  0x39   :  { %p443_p10 = scmp.ne.s32.totalorder %s357_s19, %s442_s20  ;;  %p448_p12 = scmp.lt.s32.totalorder %s442_s20, %s442_s20 }
  0x3a   :  { %v535_v5 = vsub.s32 %v57_v4, %v532_v3  ;;  %v118_v35 = vunpack.c.0.s8 %v117_v34 }
  0x3b   :  { %p449_p13 = por %p448_p12, %p447_p11 }
  0x3c   :  { %v61_v9 = vrot.slane %v50_v6, %v535_v5  ;;  %v68_v10 = vrot.slane %v54_v8, %v535_v5  ;;  %v78_v13 = vrot.slane %v51_v7, %v535_v5  ;;  %v85_v19 = vrot.slane %v71_v12, %v535_v5 }
  0x3d   :  { %v550_v36 = vsub.s32 %v118_v35, %v532_v3  ;;  %v209_v8 = vsub.s32 0, %v532_v3  ;;  %v217_v12 = vsub.s32 2, %v532_v3  ;;  %p450_p0 = pnand %p449_p13, %p443_p10 }
  0x3e   :  { %v69_v11 = vcombine.high %v61_v9, %v61_v9  ;;  %v97_v14 = vsel %vm96_vm0, %v61_v9, 0.0  ;;  %v70_v15 = vcombine.high %v68_v10, %v68_v10  ;;  %v100_v17 = vsel %vm96_vm0, %v68_v10, 0.0 }
  0x3f   :  { %v86_v20 = vcombine.high %v78_v13, %v78_v13  ;;  %v104_v23 = vsel %vm96_vm0, %v78_v13, 0.0  ;;  %v87_v25 = vcombine.high %v85_v19, %v85_v19  ;;  %v108_v28 = vsel %vm96_vm0, %v85_v19, 0.0  ;;  %v194_v19 = vld [vmem:[#allocation7] sm:$0xff] }
  0x40   :  { %v98_v16 = vsel %vm96_vm0, %v69_v11, 0.0  ;;  %v102_v21 = vsel %vm96_vm0, %v70_v15, 0.0  ;;  %v213_v9 = vsub.s32 1, %v532_v3  ;;  %v193_v11 = vld [vmem:[#allocation5] sm:$0xff]  ;;  %v221_v13 = vsub.s32 3, %v532_v3 }
  0x41   :  { %v99_v18 = vadd.f32 %v98_v16, %v97_v14  ;;  %v106_v26 = vsel %vm96_vm0, %v86_v20, 0.0  ;;  %v110_v30 = vsel %vm96_vm0, %v87_v25, 0.0  ;;  %v225_v14 = vsub.s32 4, %v532_v3 }
  0x42   :  { %v229_v15 = vsub.s32 5, %v532_v3  ;;  %v233_v16 = vsub.s32 6, %v532_v3  ;;  %v210_v20 = vrot.slane %v193_v11, %v209_v8 }
  0x43   :  { %v101_v22 = vadd.f32 %v100_v17, %v99_v18  ;;  %v237_v17 = vsub.s32 7, %v532_v3  ;;  %v226_v25 = vrot.slane %v193_v11, %v225_v14  ;;  %v297_v33 = vrot.slane %v194_v19, %v225_v14 }
  0x44   :  { %v301_v34 = vrot.slane %v194_v19, %v229_v15  ;;  %v305_v35 = vrot.slane %v194_v19, %v233_v16 }
  0x45   :  { %v103_v24 = vadd.f32 %v102_v21, %v101_v22  ;;  %v214_v21 = vrot.slane %v193_v11, %v213_v9  ;;  %v309_v3 = vrot.slane %v194_v19, %v237_v17 }
  0x47   :  { %v105_v27 = vadd.f32 %v104_v23, %v103_v24  ;;  %v218_v23 = vrot.slane %v193_v11, %v217_v12  ;;  %v222_v24 = vrot.slane %v193_v11, %v221_v13 }
  0x49   :  { %v107_v29 = vadd.f32 %v106_v26, %v105_v27  ;;  %v230_v26 = vrot.slane %v193_v11, %v229_v15  ;;  %v234_v27 = vrot.slane %v193_v11, %v233_v16 }
  0x4b   :  { %v109_v31 = vadd.f32 %v108_v28, %v107_v29  ;;  %v238_v28 = vrot.slane %v193_v11, %v237_v17  ;;  %v281_v29 = vrot.slane %v194_v19, %v209_v8 }
  0x4d   :  { %v111_v32 = vadd.f32 %v110_v30, %v109_v31  ;;  %v285_v30 = vrot.slane %v194_v19, %v213_v9  ;;  %v289_v31 = vrot.slane %v194_v19, %v217_v12 }
  0x4f   :  { %112 = vadd.xlane.f32.xlu0 %v111_v32  ;;  %v293_v32 = vrot.slane %v194_v19, %v221_v13 }
  0xdc   :  { %v113_v37 = vpop.xlane.xlu0 %112 }
  0xdd   :  { %v114_v38 = vmul.f32 0.0009765625, %v113_v37  ;;  %v239_v37 = vcombine.low %v210_v20, %v214_v21 }
  0xdf   :  { %v122_v39 = vrot.slane %v114_v38, %v550_v36  ;;  %v240_v38 = vcombine.low %v218_v23, %v222_v24 }
  0xe1   :  { %v553_v40 = vsub.f32 %v50_v6, %v122_v39  ;;  %v555_v41 = vsub.f32 %v51_v7, %v122_v39  ;;  %v256_v39 = vcombine.low %v226_v25, %v230_v26 }
  0xe3   :  { %v126_v42 = vmul.f32 %v553_v40, %v553_v40  ;;  %v127_v43 = vmul.f32 %v555_v41, %v555_v41 }
  0xe5   :  { %v130_v44 = vcombine.high %v126_v42, %v126_v42  ;;  %v137_v45 = vrot.slane %v126_v42, %v535_v5  ;;  %v154_v48 = vrot.slane %v127_v43, %v535_v5  ;;  %v147_v52 = vcombine.high %v127_v43, %v127_v43 }
  0xe6   :  { %v257_v42 = vcombine.low %v234_v27, %v238_v28  ;;  %v310_v43 = vcombine.low %v281_v29, %v285_v30 }
  0xe7   :  { %v144_v46 = vrot.slane %v130_v44, %v535_v5  ;;  %v145_v47 = vcombine.high %v137_v45, %v137_v45  ;;  %v172_v49 = vsel %vm96_vm0, %v137_v45, 0.0  ;;  %v161_v56 = vrot.slane %v147_v52, %v535_v5 }
  0xe8   :  { %v162_v57 = vcombine.high %v154_v48, %v154_v48  ;;  %v179_v60 = vsel %vm96_vm0, %v154_v48, 0.0  ;;  %v311_v44 = vcombine.low %v289_v31, %v293_v32  ;;  %v327_v45 = vcombine.low %v297_v33, %v301_v34 }
  0xe9   :  { %v173_v50 = vsel %vm96_vm0, %v145_v47, 0.0  ;;  %v146_v51 = vcombine.high %v144_v46, %v144_v46  ;;  %v175_v54 = vsel %vm96_vm0, %v144_v46, 0.0  ;;  %v163_v62 = vcombine.high %v161_v56, %v161_v56 }
  0xea   :  { %v174_v53 = vadd.f32 %v173_v50, %v172_v49  ;;  %v181_v63 = vsel %vm96_vm0, %v162_v57, 0.0  ;;  %v183_v1 = vsel %vm96_vm0, %v161_v56, 0.0  ;;  %v328_v46 = vcombine.low %v305_v35, %v309_v3 }
  0xeb   :  { %v177_v58 = vsel %vm96_vm0, %v146_v51, 0.0  ;;  %v185_v4 = vsel %vm96_vm0, %v163_v62, 0.0  ;;  %v247_v47 = vrot.slane %v239_v37, %v535_v5  ;;  %v254_v48 = vrot.slane %v240_v38, %v535_v5 }
  0xec   :  { %v176_v55 = vadd.f32 %v175_v54, %v174_v53  ;;  %v264_v49 = vrot.slane %v256_v39, %v535_v5  ;;  %v271_v50 = vrot.slane %v257_v42, %v535_v5  ;;  %v318_v51 = vrot.slane %v310_v43, %v535_v5 }
  0xed   :  { %v325_v52 = vrot.slane %v311_v44, %v535_v5  ;;  %v335_v53 = vrot.slane %v327_v45, %v535_v5  ;;  %v342_v54 = vrot.slane %v328_v46, %v535_v5  ;;  %v255_v57 = vcombine.low %v247_v47, %v254_v48 }
  0xee   :  { %v178_v59 = vadd.f32 %v177_v58, %v176_v55  ;;  %v272_v58 = vcombine.low %v264_v49, %v271_v50 }
  0xef   :  { %v343_v62 = vcombine.low %v335_v53, %v342_v54 }
  0xf0   :  { %v180_v61 = vadd.f32 %v179_v60, %v178_v59 }
  0xf2   :  { %v182_v0 = vadd.f32 %v181_v63, %v180_v61  ;;  %v326_v61 = vcombine.low %v318_v51, %v325_v52 }
  0xf4   :  { %v184_v2 = vadd.f32 %v183_v1, %v182_v0 }
  0xf6   :  { %v186_v6 = vadd.f32 %v185_v4, %v184_v2 }
  0xf8   :  { %187 = vadd.xlane.f32.xlu0 %v186_v6 }
 0x185   :  { %v188_v7 = vpop.xlane.xlu0 %187 }
 0x186   :  { %v189_v10 = vmul.f32 0.0009765625, %v188_v7 }
 0x188   :  { %v190_v18 = vmax.f32 %v189_v10, 0.0 }
 0x18a   :  { %v191_v22 = vadd.f32 1e-05, %v190_v18 }
 0x18c   :  { %374 = vrsqrt.f32 %v191_v22 }
 0x196   :  { %v375_v55 = vpop.eup %374 }
 0x197   :  { %v202_v56 = vrot.slane %v375_v55, %v550_v36 }
 0x199   :  { %v204_v59 = vmul.f32 %v202_v56, %v553_v40  ;;  %v205_v60 = vmul.f32 %v202_v56, %v555_v41 }
 0x19b   :  { %v275_v63 = vmul.f32 %v255_v57, %v204_v59  ;;  %v276_v0 = vmul.f32 %v272_v58, %v205_v60 }
 0x19d   :  { %v346_v1 = vadd.f32 %v326_v61, %v275_v63  ;;  %v347_v2 = vadd.f32 %v343_v62, %v276_v0 }
 0x19f   :  { %348 = vst [vmem:[#allocation8] sm:$0xff] %v346_v1  ;;  %349 = vst [vmem:[#allocation8 + $0x8] sm:$0xff] %v347_v2 }
 0x1a0   :  { %453 = shalt.err (!%p450_p0)
}
 0x1a1   :  { %s454_s23 = scalar_lea.hbm %s607_s3, 256 }
 0x1a2   :  { %p455_p1 = scmp.ne.s32.totalorder %s607_s3, %s454_s23  ;;  %p458_p2 = scmp.lt.u32.totalorder %s454_s23, %s607_s3 }
 0x1a4   :  { %p460_p3 = pnand %p458_p2, %p455_p1 }
 0x1a6   :  { %463 = shalt.err (!%p460_p3)
}
 0x1a7   :  { %359 = dma.vmem_to_hbm [thread:$0]  %s357_s19, 256, %s607_s3, [#allocation4]  }
 0x1a8   :  { %468 = dma.done.wait [#allocation4], 256  }
 0x1a9   :  { %469 = vsyncadd [#allocation4], 4294967040 }
 0x1aa   :  { %363 = vsyncpa [#allocation3], 1 }
 0x1ab   :  { %364 = vsyncpa [#allocation6], 1 }
 0x1ac   :  { %365 = vsyncpa [#allocation4], 1 }

</bundles_post_ra>
